<compile_context>
chip_gen: v5e
topology: v5e:2x2
jax: 0.10.0
libtpu: 0.0.40
codegen_flags: <defaults>
</compile_context>

<pallas_src>
import functools
import math

import jax
import jax.numpy as jnp
from jax import lax
from jax.experimental import pallas as pl
from jax.experimental.pallas import tpu as pltpu


def _round_up(n, m):
    return ((n + m - 1) // m) * m


# ----------------------------------------------------------------------------
# Fast path: everything (gates, hidden states) register/value resident.
# Valid while seq*Bp*4H stays small (a few vregs).
# ----------------------------------------------------------------------------
def _lstm_seq_kernel_resident(
    x_ref,       # (seq*Bp, D)     flattened, batch-padded input
    wih_ref,     # (D, 4H)         W_ih^T  (g-gate cols pre-scaled by 2)
    whh_ref,     # (H, 4H)         W_hh^T  (g-gate cols pre-scaled by 2)
    b_ref,       # (1, 4H)         b_ih + b_hh (g-gate section pre-scaled by 2)
    wout_ref,    # (H, C1p)        hidden2probs weight^T, lane-padded
    bout_ref,    # (1, C1p)        hidden2probs bias, lane-padded
    h0_ref,      # (Bp, H)         initial hidden (batch-padded)
    c0_ref,      # (Bp, H)         initial cell   (batch-padded)
    probs_ref,   # (seq*Bp, C1p)   output: hidden2probs(h_t) for every t
    hN_ref,      # (Bp, H)         output: final hidden
    cN_ref,      # (Bp, H)         output: final cell
    *,
    seq: int,
    batch_p: int,
    hidden: int,
):
    H = hidden
    Bp = batch_p

    # Hoisted, time-parallel input projection: one MXU matmul, kept as a value.
    gx = (
        jnp.dot(x_ref[...], wih_ref[...], preferred_element_type=jnp.float32)
        + b_ref[...]
    )                                                     # (seq*Bp, 4H)

    whh = whh_ref[...]                                    # loop-invariant

    h = h0_ref[...]
    c = c0_ref[...]
    hs = []
    # Fully static unroll; only h @ W_hh^T + elementwise per step on the
    # critical path, and a single full-width sigmoid per step.
    for t in range(seq):
        gates = gx[t * Bp:(t + 1) * Bp, :] + jnp.dot(
            h, whh, preferred_element_type=jnp.float32
        )                                                 # (Bp, 4H)
        sig = jax.nn.sigmoid(gates)                       # one EUP push
        i_g = sig[:, 0 * H:1 * H]
        f_g = sig[:, 1 * H:2 * H]
        g_g = 2.0 * sig[:, 2 * H:3 * H] - 1.0             # tanh via 2*sig(2x)-1
        o_g = sig[:, 3 * H:4 * H]
        c = f_g * c + i_g * g_g
        h = o_g * jnp.tanh(c)
        hs.append(h)

    hN_ref[...] = h
    cN_ref[...] = c

    # Hoisted output projection: one MXU matmul, lane-dense writeback.
    hs_all = jnp.concatenate(hs, axis=0)                  # (seq*Bp, H)
    probs_ref[...] = (
        jnp.dot(hs_all, wout_ref[...], preferred_element_type=jnp.float32)
        + bout_ref[...]
    )


# ----------------------------------------------------------------------------
# General path: gate matrix / hidden states staged in VMEM scratch, bounded
# unroll fori_loop. Used when seq*Bp is too large for the resident path.
# ----------------------------------------------------------------------------
def _lstm_seq_kernel_scratch(
    x_ref, wih_ref, whh_ref, b_ref, wout_ref, bout_ref, h0_ref, c0_ref,
    probs_ref, hN_ref, cN_ref,
    gx_sc,       # VMEM (seq*Bp, 4H) f32  precomputed x-part of the gates
    hs_sc,       # VMEM (seq*Bp, H)  f32  collected hidden states
    *,
    seq: int,
    batch_p: int,
    hidden: int,
    unroll: int,
):
    H = hidden

    gx_sc[...] = (
        jnp.dot(x_ref[...], wih_ref[...], preferred_element_type=jnp.float32)
        + b_ref[...]
    )

    whh = whh_ref[...]

    def step(t, carry):
        h, c = carry
        row = pl.multiple_of(t * batch_p, batch_p)
        gates = gx_sc[pl.ds(row, batch_p), :] + jnp.dot(
            h, whh, preferred_element_type=jnp.float32
        )
        sig = jax.nn.sigmoid(gates)                       # single EUP push
        i_g = sig[:, 0 * H:1 * H]
        f_g = sig[:, 1 * H:2 * H]
        g_g = 2.0 * sig[:, 2 * H:3 * H] - 1.0             # tanh via 2*sig(2x)-1
        o_g = sig[:, 3 * H:4 * H]
        c_new = f_g * c + i_g * g_g
        h_new = o_g * jnp.tanh(c_new)
        hs_sc[pl.ds(row, batch_p), :] = h_new
        return (h_new, c_new)

    h_n, c_n = lax.fori_loop(
        0, seq, step, (h0_ref[...], c0_ref[...]), unroll=unroll
    )

    hN_ref[...] = h_n
    cN_ref[...] = c_n

    probs_ref[...] = (
        jnp.dot(hs_sc[...], wout_ref[...], preferred_element_type=jnp.float32)
        + bout_ref[...]
    )


def reinforced_lstm_forward(x, hidden, params, seq):
    """Forward pass of ReinforcedLSTM (EMBEDDING=False).

    x      : any shape reshapable to (seq, batch, input_size + input_classes)
    hidden : (h0, c0), each (1, batch, hidden_nodes)
    params : dict of float32 arrays (PyTorch-layout weights)
    returns: (probs, (h_n, c_n))
    """
    h0, c0 = hidden
    batch = c0.shape[1]
    x = x.reshape(seq, batch, -1).astype(jnp.float32)

    D = x.shape[-1]
    H = params["w_hh"].shape[1]          # w_hh: (4H, H)
    C1 = params["w_out"].shape[0]        # w_out: (C+1, H)

    Bp = _round_up(max(batch, 8), 8)     # pad batch to a sublane multiple
    C1p = _round_up(max(C1, 128), 128)   # pad output classes to full lanes

    # ---- Plain-JAX glue: transposes, g-gate pre-scaling, padding ------------
    # tanh(x) == 2*sigmoid(2x) - 1: scale the g-gate rows (PyTorch order
    # i, f, g, o -> rows 2H:3H) of W_ih, W_hh and the combined bias by 2 so the
    # kernel needs only a single sigmoid per step.
    gate_scale = jnp.ones((4 * H, 1), jnp.float32).at[2 * H:3 * H, :].set(2.0)
    wih_t = (params["w_ih"].astype(jnp.float32) * gate_scale).T          # (D, 4H)
    whh_t = (params["w_hh"].astype(jnp.float32) * gate_scale).T          # (H, 4H)
    b = ((params["b_ih"] + params["b_hh"]).astype(jnp.float32)
         * gate_scale[:, 0])[None, :]                                    # (1, 4H)
    wout_t = jnp.zeros((H, C1p), jnp.float32).at[:, :C1].set(params["w_out"].T)
    bout = jnp.zeros((1, C1p), jnp.float32).at[:, :C1].set(params["b_out"][None, :])

    x_p = jnp.zeros((seq, Bp, D), jnp.float32).at[:, :batch, :].set(x)
    x_flat = x_p.reshape(seq * Bp, D)
    h0_p = jnp.zeros((Bp, H), jnp.float32).at[:batch].set(h0[0])
    c0_p = jnp.zeros((Bp, H), jnp.float32).at[:batch].set(c0[0])

    # ---- Choose kernel path and VMEM budget ----------------------------------
    gx_bytes = seq * Bp * 4 * H * 4
    hs_bytes = seq * Bp * H * 4
    resident = (gx_bytes + hs_bytes) <= (64 << 10)        # a few vregs worth

    io_bytes = 4 * (
        seq * Bp * D + D * 4 * H + H * 4 * H + 4 * H + H * C1p + C1p
        + 2 * Bp * H                     # h0, c0
        + seq * Bp * C1p + 2 * Bp * H    # outputs
    )
    scratch_bytes = 0 if resident else (gx_bytes + hs_bytes)
    vmem_limit = min(max(2 * io_bytes + scratch_bytes + (4 << 20), 8 << 20),
                     64 << 20)

    if resident:
        kernel = functools.partial(
            _lstm_seq_kernel_resident, seq=seq, batch_p=Bp, hidden=H)
        scratch_shapes = []
    else:
        kernel = functools.partial(
            _lstm_seq_kernel_scratch, seq=seq, batch_p=Bp, hidden=H,
            unroll=max(1, min(seq, 8)))
        scratch_shapes = [
            pltpu.VMEM((seq * Bp, 4 * H), jnp.float32),   # gates_x
            pltpu.VMEM((seq * Bp, H), jnp.float32),       # hidden states
        ]

    probs_pad, h_n_p, c_n_p = pl.pallas_call(
        kernel,
        out_shape=(
            jax.ShapeDtypeStruct((seq * Bp, C1p), jnp.float32),
            jax.ShapeDtypeStruct((Bp, H), jnp.float32),
            jax.ShapeDtypeStruct((Bp, H), jnp.float32),
        ),
        grid_spec=pltpu.PrefetchScalarGridSpec(
            num_scalar_prefetch=0,
            grid=(1,),
            in_specs=[
                pl.BlockSpec((seq * Bp, D), lambda i: (0, 0)),   # x (flattened)
                pl.BlockSpec((D, 4 * H), lambda i: (0, 0)),      # W_ih^T
                pl.BlockSpec((H, 4 * H), lambda i: (0, 0)),      # W_hh^T
                pl.BlockSpec((1, 4 * H), lambda i: (0, 0)),      # bias
                pl.BlockSpec((H, C1p), lambda i: (0, 0)),        # W_out^T (padded)
                pl.BlockSpec((1, C1p), lambda i: (0, 0)),        # b_out (padded)
                pl.BlockSpec((Bp, H), lambda i: (0, 0)),         # h0
                pl.BlockSpec((Bp, H), lambda i: (0, 0)),         # c0
            ],
            out_specs=[
                pl.BlockSpec((seq * Bp, C1p), lambda i: (0, 0)),  # probs (padded)
                pl.BlockSpec((Bp, H), lambda i: (0, 0)),          # h_n
                pl.BlockSpec((Bp, H), lambda i: (0, 0)),          # c_n
            ],
            scratch_shapes=scratch_shapes,
        ),
        compiler_params=pltpu.CompilerParams(
            dimension_semantics=("arbitrary",),
            vmem_limit_bytes=int(vmem_limit),
        ),
    )(x_flat, wih_t, whh_t, b, wout_t, bout, h0_p, c0_p)

    probs = probs_pad.reshape(seq, Bp, C1p)[:, :batch, :C1]
    next_hidden = (h_n_p[:batch][None, :, :], c_n_p[:batch][None, :, :])
    out = probs if seq > 1 else probs[-1]
    return out, next_hidden


# ----------------------------------------------------------------------------
# Pure-JAX reference (mirrors torch.nn.LSTM + nn.Linear) for validation.
# ----------------------------------------------------------------------------
def _reference_forward(x, hidden, params, seq):
    h0, c0 = hidden
    batch = c0.shape[1]
    x = x.reshape(seq, batch, -1).astype(jnp.float32)
    H = params["w_hh"].shape[1]

    def step(carry, x_t):
        h, c = carry
        gates = (x_t @ params["w_ih"].T + h @ params["w_hh"].T
                 + params["b_ih"] + params["b_hh"])
        i = jax.nn.sigmoid(gates[:, 0 * H:1 * H])
        f = jax.nn.sigmoid(gates[:, 1 * H:2 * H])
        g = jnp.tanh(gates[:, 2 * H:3 * H])
        o = jax.nn.sigmoid(gates[:, 3 * H:4 * H])
        c_new = f * c + i * g
        h_new = o * jnp.tanh(c_new)
        return (h_new, c_new), h_new

    (h_n, c_n), lstm_out = lax.scan(step, (h0[0], c0[0]), x)
    probs = lstm_out @ params["w_out"].T + params["b_out"]
    out = probs if seq > 1 else probs[-1]
    return out, (h_n[None], c_n[None])


# ----------------------------------------------------------------------------
# Deterministic parameter initialization (PyTorch-style uniform(-k, k)).
# ----------------------------------------------------------------------------
def init_params(key, input_size, input_classes, hidden_nodes):
    D = input_size + input_classes
    H = hidden_nodes
    C1 = input_classes + 1
    k_lstm = 1.0 / math.sqrt(H)
    k_lin = 1.0 / math.sqrt(H)
    keys = jax.random.split(key, 6)
    return {
        "w_ih": jax.random.uniform(keys[0], (4 * H, D), jnp.float32, -k_lstm, k_lstm),
        "w_hh": jax.random.uniform(keys[1], (4 * H, H), jnp.float32, -k_lstm, k_lstm),
        "b_ih": jax.random.uniform(keys[2], (4 * H,), jnp.float32, -k_lstm, k_lstm),
        "b_hh": jax.random.uniform(keys[3], (4 * H,), jnp.float32, -k_lstm, k_lstm),
        "w_out": jax.random.uniform(keys[4], (C1, H), jnp.float32, -k_lin, k_lin),
        "b_out": jax.random.uniform(keys[5], (C1,), jnp.float32, -k_lin, k_lin),
    }


if __name__ == "__main__":
    # Small shapes consistent with the module:
    INPUT_SIZE = 20
    INPUT_CLASSES = 12      # model input dim = 20 + 12 = 32
    HIDDEN_NODES = 32
    HIDDEN_LAYERS = 1       # nn.LSTM here is single-layer
    BATCH = 2
    SEQ = 8

    key = jax.random.PRNGKey(0)
    k_x, k_p, k_x2 = jax.random.split(key, 3)

    params = init_params(k_p, INPUT_SIZE, INPUT_CLASSES, HIDDEN_NODES)

    x = jax.random.normal(
        k_x, (SEQ, BATCH, INPUT_SIZE + INPUT_CLASSES), dtype=jnp.float32
    )
    # reset_hidden(batch_size): zeros of shape (hidden_layers, batch, hidden)
    h0 = jnp.zeros((HIDDEN_LAYERS, BATCH, HIDDEN_NODES), jnp.float32)
    c0 = jnp.zeros((HIDDEN_LAYERS, BATCH, HIDDEN_NODES), jnp.float32)

    # --- seq > 1, register-resident fast path -------------------------------
    out, (h_n, c_n) = reinforced_lstm_forward(x, (h0, c0), params, SEQ)
    jax.block_until_ready((out, h_n, c_n))

    ref_out, (ref_h, ref_c) = _reference_forward(x, (h0, c0), params, SEQ)
    assert out.shape == (SEQ, BATCH, INPUT_CLASSES + 1)
    assert h_n.shape == (1, BATCH, HIDDEN_NODES)
    assert c_n.shape == (1, BATCH, HIDDEN_NODES)
    assert jnp.allclose(out, ref_out, atol=2e-4, rtol=2e-4)
    assert jnp.allclose(h_n, ref_h, atol=2e-4, rtol=2e-4)
    assert jnp.allclose(c_n, ref_c, atol=2e-4, rtol=2e-4)

    # --- seq == 1 path (hidden2probs(lstm_out[-1])) --------------------------
    out1, (h1, c1) = reinforced_lstm_forward(x[:1], (h0, c0), params, 1)
    ref1, (rh1, rc1) = _reference_forward(x[:1], (h0, c0), params, 1)
    jax.block_until_ready(out1)
    assert out1.shape == (BATCH, INPUT_CLASSES + 1)
    assert jnp.allclose(out1, ref1, atol=2e-4, rtol=2e-4)
    assert jnp.allclose(h1, rh1, atol=2e-4, rtol=2e-4)
    assert jnp.allclose(c1, rc1, atol=2e-4, rtol=2e-4)

    # --- longer seq: exercises the VMEM-scratch + bounded-unroll path --------
    SEQ_LONG = 20
    x_long = jax.random.normal(
        k_x2, (SEQ_LONG, BATCH, INPUT_SIZE + INPUT_CLASSES), dtype=jnp.float32
    )
    outL, (hL, cL) = reinforced_lstm_forward(x_long, (h0, c0), params, SEQ_LONG)
    refL, (rhL, rcL) = _reference_forward(x_long, (h0, c0), params, SEQ_LONG)
    jax.block_until_ready(outL)
    assert outL.shape == (SEQ_LONG, BATCH, INPUT_CLASSES + 1)
    assert jnp.allclose(outL, refL, atol=2e-4, rtol=2e-4)
    assert jnp.allclose(hL, rhL, atol=2e-4, rtol=2e-4)
    assert jnp.allclose(cL, rcL, atol=2e-4, rtol=2e-4)

    print("KERNEL_OK")
</pallas_src>

<mosaic_0001>
module attributes {stable_mosaic.version = 11 : i64} {
  func.func @_lstm_seq_kernel_resident(%arg0: i32, %arg1: memref<64x32xf32, #tpu.memory_space<vmem>>, %arg2: memref<32x128xf32, #tpu.memory_space<vmem>>, %arg3: memref<32x128xf32, #tpu.memory_space<vmem>>, %arg4: memref<1x128xf32, #tpu.memory_space<vmem>>, %arg5: memref<32x128xf32, #tpu.memory_space<vmem>>, %arg6: memref<1x128xf32, #tpu.memory_space<vmem>>, %arg7: memref<8x32xf32, #tpu.memory_space<vmem>>, %arg8: memref<8x32xf32, #tpu.memory_space<vmem>>, %arg9: memref<64x128xf32, #tpu.memory_space<vmem>>, %arg10: memref<8x32xf32, #tpu.memory_space<vmem>>, %arg11: memref<8x32xf32, #tpu.memory_space<vmem>>) attributes {dimension_semantics = [#tpu.dimension_semantics<arbitrary>], iteration_bounds = array<i64: 1>, scalar_prefetch = 0 : i64, scratch_operands = 0 : i64, tpu.core_type = #tpu.core_type<tc>, window_params = [{pipeline_mode = #tpu.pipeline_mode<synchronous>, transform_indices = @transform_0, window_bounds = array<i64: 64, 32>}, {pipeline_mode = #tpu.pipeline_mode<synchronous>, transform_indices = @transform_1, window_bounds = array<i64: 32, 128>}, {pipeline_mode = #tpu.pipeline_mode<synchronous>, transform_indices = @transform_2, window_bounds = array<i64: 32, 128>}, {pipeline_mode = #tpu.pipeline_mode<synchronous>, transform_indices = @transform_3, window_bounds = array<i64: 1, 128>}, {pipeline_mode = #tpu.pipeline_mode<synchronous>, transform_indices = @transform_4, window_bounds = array<i64: 32, 128>}, {pipeline_mode = #tpu.pipeline_mode<synchronous>, transform_indices = @transform_5, window_bounds = array<i64: 1, 128>}, {pipeline_mode = #tpu.pipeline_mode<synchronous>, transform_indices = @transform_6, window_bounds = array<i64: 8, 32>}, {pipeline_mode = #tpu.pipeline_mode<synchronous>, transform_indices = @transform_7, window_bounds = array<i64: 8, 32>}, {pipeline_mode = #tpu.pipeline_mode<synchronous>, transform_indices = @transform_8, window_bounds = array<i64: 64, 128>}, {pipeline_mode = #tpu.pipeline_mode<synchronous>, transform_indices = @transform_9, window_bounds = array<i64: 8, 32>}, {pipeline_mode = #tpu.pipeline_mode<synchronous>, transform_indices = @transform_10, window_bounds = array<i64: 8, 32>}]} {
    %c0 = arith.constant 0 : index
    %c0_0 = arith.constant 0 : index
    %0 = vector.load %arg1[%c0, %c0_0] : memref<64x32xf32, #tpu.memory_space<vmem>>, vector<64x32xf32>
    %c0_1 = arith.constant 0 : index
    %c0_2 = arith.constant 0 : index
    %1 = vector.load %arg2[%c0_1, %c0_2] : memref<32x128xf32, #tpu.memory_space<vmem>>, vector<32x128xf32>
    %cst = arith.constant dense<0.000000e+00> : vector<64x128xf32>
    %2 = tpu.matmul %0, %1, %cst {dimension_numbers = #tpu.dot_dimension_numbers<[1], [0], [0], [1], [0, 0, 1, 1], [], []>} : vector<64x32xf32>, vector<32x128xf32>, vector<64x128xf32> -> vector<64x128xf32>
    %c0_3 = arith.constant 0 : index
    %c0_4 = arith.constant 0 : index
    %3 = vector.load %arg4[%c0_3, %c0_4] : memref<1x128xf32, #tpu.memory_space<vmem>>, vector<1x128xf32>
    %4 = vector.broadcast %3 : vector<1x128xf32> to vector<64x128xf32>
    %5 = arith.addf %2, %4 : vector<64x128xf32>
    %c0_5 = arith.constant 0 : index
    %c0_6 = arith.constant 0 : index
    %6 = vector.load %arg3[%c0_5, %c0_6] : memref<32x128xf32, #tpu.memory_space<vmem>>, vector<32x128xf32>
    %c0_7 = arith.constant 0 : index
    %c0_8 = arith.constant 0 : index
    %7 = vector.load %arg7[%c0_7, %c0_8] : memref<8x32xf32, #tpu.memory_space<vmem>>, vector<8x32xf32>
    %c0_9 = arith.constant 0 : index
    %c0_10 = arith.constant 0 : index
    %8 = vector.load %arg8[%c0_9, %c0_10] : memref<8x32xf32, #tpu.memory_space<vmem>>, vector<8x32xf32>
    %9 = vector.extract_strided_slice %5 {offsets = [0, 0], sizes = [8, 128], strides = [1, 1]} : vector<64x128xf32> to vector<8x128xf32>
    %cst_11 = arith.constant dense<0.000000e+00> : vector<8x128xf32>
    %10 = tpu.matmul %7, %6, %cst_11 {dimension_numbers = #tpu.dot_dimension_numbers<[1], [0], [0], [1], [0, 0, 1, 1], [], []>} : vector<8x32xf32>, vector<32x128xf32>, vector<8x128xf32> -> vector<8x128xf32>
    %11 = arith.addf %9, %10 : vector<8x128xf32>
    %12 = arith.negf %11 : vector<8x128xf32>
    %13 = math.exp %12 : vector<8x128xf32>
    %cst_12 = arith.constant 1.000000e+00 : f32
    %14 = vector.broadcast %cst_12 : f32 to vector<8x128xf32>
    %15 = arith.addf %14, %13 : vector<8x128xf32>
    %16 = arith.divf %14, %15 : vector<8x128xf32>
    %17 = vector.extract_strided_slice %16 {offsets = [0, 0], sizes = [8, 32], strides = [1, 1]} : vector<8x128xf32> to vector<8x32xf32>
    %18 = vector.extract_strided_slice %16 {offsets = [0, 32], sizes = [8, 32], strides = [1, 1]} : vector<8x128xf32> to vector<8x32xf32>
    %19 = vector.extract_strided_slice %16 {offsets = [0, 64], sizes = [8, 32], strides = [1, 1]} : vector<8x128xf32> to vector<8x32xf32>
    %cst_13 = arith.constant 2.000000e+00 : f32
    %20 = vector.broadcast %cst_13 : f32 to vector<8x32xf32>
    %21 = arith.mulf %20, %19 : vector<8x32xf32>
    %cst_14 = arith.constant 1.000000e+00 : f32
    %22 = vector.broadcast %cst_14 : f32 to vector<8x32xf32>
    %23 = arith.subf %21, %22 : vector<8x32xf32>
    %24 = vector.extract_strided_slice %16 {offsets = [0, 96], sizes = [8, 32], strides = [1, 1]} : vector<8x128xf32> to vector<8x32xf32>
    %25 = arith.mulf %18, %8 : vector<8x32xf32>
    %26 = arith.mulf %17, %23 : vector<8x32xf32>
    %27 = arith.addf %25, %26 : vector<8x32xf32>
    %28 = math.tanh %27 : vector<8x32xf32>
    %29 = arith.mulf %24, %28 : vector<8x32xf32>
    %30 = vector.extract_strided_slice %5 {offsets = [8, 0], sizes = [8, 128], strides = [1, 1]} : vector<64x128xf32> to vector<8x128xf32>
    %cst_15 = arith.constant dense<0.000000e+00> : vector<8x128xf32>
    %31 = tpu.matmul %29, %6, %cst_15 {dimension_numbers = #tpu.dot_dimension_numbers<[1], [0], [0], [1], [0, 0, 1, 1], [], []>} : vector<8x32xf32>, vector<32x128xf32>, vector<8x128xf32> -> vector<8x128xf32>
    %32 = arith.addf %30, %31 : vector<8x128xf32>
    %33 = arith.negf %32 : vector<8x128xf32>
    %34 = math.exp %33 : vector<8x128xf32>
    %cst_16 = arith.constant 1.000000e+00 : f32
    %35 = vector.broadcast %cst_16 : f32 to vector<8x128xf32>
    %36 = arith.addf %35, %34 : vector<8x128xf32>
    %37 = arith.divf %35, %36 : vector<8x128xf32>
    %38 = vector.extract_strided_slice %37 {offsets = [0, 0], sizes = [8, 32], strides = [1, 1]} : vector<8x128xf32> to vector<8x32xf32>
    %39 = vector.extract_strided_slice %37 {offsets = [0, 32], sizes = [8, 32], strides = [1, 1]} : vector<8x128xf32> to vector<8x32xf32>
    %40 = vector.extract_strided_slice %37 {offsets = [0, 64], sizes = [8, 32], strides = [1, 1]} : vector<8x128xf32> to vector<8x32xf32>
    %cst_17 = arith.constant 2.000000e+00 : f32
    %41 = vector.broadcast %cst_17 : f32 to vector<8x32xf32>
    %42 = arith.mulf %41, %40 : vector<8x32xf32>
    %cst_18 = arith.constant 1.000000e+00 : f32
    %43 = vector.broadcast %cst_18 : f32 to vector<8x32xf32>
    %44 = arith.subf %42, %43 : vector<8x32xf32>
    %45 = vector.extract_strided_slice %37 {offsets = [0, 96], sizes = [8, 32], strides = [1, 1]} : vector<8x128xf32> to vector<8x32xf32>
    %46 = arith.mulf %39, %27 : vector<8x32xf32>
    %47 = arith.mulf %38, %44 : vector<8x32xf32>
    %48 = arith.addf %46, %47 : vector<8x32xf32>
    %49 = math.tanh %48 : vector<8x32xf32>
    %50 = arith.mulf %45, %49 : vector<8x32xf32>
    %51 = vector.extract_strided_slice %5 {offsets = [16, 0], sizes = [8, 128], strides = [1, 1]} : vector<64x128xf32> to vector<8x128xf32>
    %cst_19 = arith.constant dense<0.000000e+00> : vector<8x128xf32>
    %52 = tpu.matmul %50, %6, %cst_19 {dimension_numbers = #tpu.dot_dimension_numbers<[1], [0], [0], [1], [0, 0, 1, 1], [], []>} : vector<8x32xf32>, vector<32x128xf32>, vector<8x128xf32> -> vector<8x128xf32>
    %53 = arith.addf %51, %52 : vector<8x128xf32>
    %54 = arith.negf %53 : vector<8x128xf32>
    %55 = math.exp %54 : vector<8x128xf32>
    %cst_20 = arith.constant 1.000000e+00 : f32
    %56 = vector.broadcast %cst_20 : f32 to vector<8x128xf32>
    %57 = arith.addf %56, %55 : vector<8x128xf32>
    %58 = arith.divf %56, %57 : vector<8x128xf32>
    %59 = vector.extract_strided_slice %58 {offsets = [0, 0], sizes = [8, 32], strides = [1, 1]} : vector<8x128xf32> to vector<8x32xf32>
    %60 = vector.extract_strided_slice %58 {offsets = [0, 32], sizes = [8, 32], strides = [1, 1]} : vector<8x128xf32> to vector<8x32xf32>
    %61 = vector.extract_strided_slice %58 {offsets = [0, 64], sizes = [8, 32], strides = [1, 1]} : vector<8x128xf32> to vector<8x32xf32>
    %cst_21 = arith.constant 2.000000e+00 : f32
    %62 = vector.broadcast %cst_21 : f32 to vector<8x32xf32>
    %63 = arith.mulf %62, %61 : vector<8x32xf32>
    %cst_22 = arith.constant 1.000000e+00 : f32
    %64 = vector.broadcast %cst_22 : f32 to vector<8x32xf32>
    %65 = arith.subf %63, %64 : vector<8x32xf32>
    %66 = vector.extract_strided_slice %58 {offsets = [0, 96], sizes = [8, 32], strides = [1, 1]} : vector<8x128xf32> to vector<8x32xf32>
    %67 = arith.mulf %60, %48 : vector<8x32xf32>
    %68 = arith.mulf %59, %65 : vector<8x32xf32>
    %69 = arith.addf %67, %68 : vector<8x32xf32>
    %70 = math.tanh %69 : vector<8x32xf32>
    %71 = arith.mulf %66, %70 : vector<8x32xf32>
    %72 = vector.extract_strided_slice %5 {offsets = [24, 0], sizes = [8, 128], strides = [1, 1]} : vector<64x128xf32> to vector<8x128xf32>
    %cst_23 = arith.constant dense<0.000000e+00> : vector<8x128xf32>
    %73 = tpu.matmul %71, %6, %cst_23 {dimension_numbers = #tpu.dot_dimension_numbers<[1], [0], [0], [1], [0, 0, 1, 1], [], []>} : vector<8x32xf32>, vector<32x128xf32>, vector<8x128xf32> -> vector<8x128xf32>
    %74 = arith.addf %72, %73 : vector<8x128xf32>
    %75 = arith.negf %74 : vector<8x128xf32>
    %76 = math.exp %75 : vector<8x128xf32>
    %cst_24 = arith.constant 1.000000e+00 : f32
    %77 = vector.broadcast %cst_24 : f32 to vector<8x128xf32>
    %78 = arith.addf %77, %76 : vector<8x128xf32>
    %79 = arith.divf %77, %78 : vector<8x128xf32>
    %80 = vector.extract_strided_slice %79 {offsets = [0, 0], sizes = [8, 32], strides = [1, 1]} : vector<8x128xf32> to vector<8x32xf32>
    %81 = vector.extract_strided_slice %79 {offsets = [0, 32], sizes = [8, 32], strides = [1, 1]} : vector<8x128xf32> to vector<8x32xf32>
    %82 = vector.extract_strided_slice %79 {offsets = [0, 64], sizes = [8, 32], strides = [1, 1]} : vector<8x128xf32> to vector<8x32xf32>
    %cst_25 = arith.constant 2.000000e+00 : f32
    %83 = vector.broadcast %cst_25 : f32 to vector<8x32xf32>
    %84 = arith.mulf %83, %82 : vector<8x32xf32>
    %cst_26 = arith.constant 1.000000e+00 : f32
    %85 = vector.broadcast %cst_26 : f32 to vector<8x32xf32>
    %86 = arith.subf %84, %85 : vector<8x32xf32>
    %87 = vector.extract_strided_slice %79 {offsets = [0, 96], sizes = [8, 32], strides = [1, 1]} : vector<8x128xf32> to vector<8x32xf32>
    %88 = arith.mulf %81, %69 : vector<8x32xf32>
    %89 = arith.mulf %80, %86 : vector<8x32xf32>
    %90 = arith.addf %88, %89 : vector<8x32xf32>
    %91 = math.tanh %90 : vector<8x32xf32>
    %92 = arith.mulf %87, %91 : vector<8x32xf32>
    %93 = vector.extract_strided_slice %5 {offsets = [32, 0], sizes = [8, 128], strides = [1, 1]} : vector<64x128xf32> to vector<8x128xf32>
    %cst_27 = arith.constant dense<0.000000e+00> : vector<8x128xf32>
    %94 = tpu.matmul %92, %6, %cst_27 {dimension_numbers = #tpu.dot_dimension_numbers<[1], [0], [0], [1], [0, 0, 1, 1], [], []>} : vector<8x32xf32>, vector<32x128xf32>, vector<8x128xf32> -> vector<8x128xf32>
    %95 = arith.addf %93, %94 : vector<8x128xf32>
    %96 = arith.negf %95 : vector<8x128xf32>
    %97 = math.exp %96 : vector<8x128xf32>
    %cst_28 = arith.constant 1.000000e+00 : f32
    %98 = vector.broadcast %cst_28 : f32 to vector<8x128xf32>
    %99 = arith.addf %98, %97 : vector<8x128xf32>
    %100 = arith.divf %98, %99 : vector<8x128xf32>
    %101 = vector.extract_strided_slice %100 {offsets = [0, 0], sizes = [8, 32], strides = [1, 1]} : vector<8x128xf32> to vector<8x32xf32>
    %102 = vector.extract_strided_slice %100 {offsets = [0, 32], sizes = [8, 32], strides = [1, 1]} : vector<8x128xf32> to vector<8x32xf32>
    %103 = vector.extract_strided_slice %100 {offsets = [0, 64], sizes = [8, 32], strides = [1, 1]} : vector<8x128xf32> to vector<8x32xf32>
    %cst_29 = arith.constant 2.000000e+00 : f32
    %104 = vector.broadcast %cst_29 : f32 to vector<8x32xf32>
    %105 = arith.mulf %104, %103 : vector<8x32xf32>
    %cst_30 = arith.constant 1.000000e+00 : f32
    %106 = vector.broadcast %cst_30 : f32 to vector<8x32xf32>
    %107 = arith.subf %105, %106 : vector<8x32xf32>
    %108 = vector.extract_strided_slice %100 {offsets = [0, 96], sizes = [8, 32], strides = [1, 1]} : vector<8x128xf32> to vector<8x32xf32>
    %109 = arith.mulf %102, %90 : vector<8x32xf32>
    %110 = arith.mulf %101, %107 : vector<8x32xf32>
    %111 = arith.addf %109, %110 : vector<8x32xf32>
    %112 = math.tanh %111 : vector<8x32xf32>
    %113 = arith.mulf %108, %112 : vector<8x32xf32>
    %114 = vector.extract_strided_slice %5 {offsets = [40, 0], sizes = [8, 128], strides = [1, 1]} : vector<64x128xf32> to vector<8x128xf32>
    %cst_31 = arith.constant dense<0.000000e+00> : vector<8x128xf32>
    %115 = tpu.matmul %113, %6, %cst_31 {dimension_numbers = #tpu.dot_dimension_numbers<[1], [0], [0], [1], [0, 0, 1, 1], [], []>} : vector<8x32xf32>, vector<32x128xf32>, vector<8x128xf32> -> vector<8x128xf32>
    %116 = arith.addf %114, %115 : vector<8x128xf32>
    %117 = arith.negf %116 : vector<8x128xf32>
    %118 = math.exp %117 : vector<8x128xf32>
    %cst_32 = arith.constant 1.000000e+00 : f32
    %119 = vector.broadcast %cst_32 : f32 to vector<8x128xf32>
    %120 = arith.addf %119, %118 : vector<8x128xf32>
    %121 = arith.divf %119, %120 : vector<8x128xf32>
    %122 = vector.extract_strided_slice %121 {offsets = [0, 0], sizes = [8, 32], strides = [1, 1]} : vector<8x128xf32> to vector<8x32xf32>
    %123 = vector.extract_strided_slice %121 {offsets = [0, 32], sizes = [8, 32], strides = [1, 1]} : vector<8x128xf32> to vector<8x32xf32>
    %124 = vector.extract_strided_slice %121 {offsets = [0, 64], sizes = [8, 32], strides = [1, 1]} : vector<8x128xf32> to vector<8x32xf32>
    %cst_33 = arith.constant 2.000000e+00 : f32
    %125 = vector.broadcast %cst_33 : f32 to vector<8x32xf32>
    %126 = arith.mulf %125, %124 : vector<8x32xf32>
    %cst_34 = arith.constant 1.000000e+00 : f32
    %127 = vector.broadcast %cst_34 : f32 to vector<8x32xf32>
    %128 = arith.subf %126, %127 : vector<8x32xf32>
    %129 = vector.extract_strided_slice %121 {offsets = [0, 96], sizes = [8, 32], strides = [1, 1]} : vector<8x128xf32> to vector<8x32xf32>
    %130 = arith.mulf %123, %111 : vector<8x32xf32>
    %131 = arith.mulf %122, %128 : vector<8x32xf32>
    %132 = arith.addf %130, %131 : vector<8x32xf32>
    %133 = math.tanh %132 : vector<8x32xf32>
    %134 = arith.mulf %129, %133 : vector<8x32xf32>
    %135 = vector.extract_strided_slice %5 {offsets = [48, 0], sizes = [8, 128], strides = [1, 1]} : vector<64x128xf32> to vector<8x128xf32>
    %cst_35 = arith.constant dense<0.000000e+00> : vector<8x128xf32>
    %136 = tpu.matmul %134, %6, %cst_35 {dimension_numbers = #tpu.dot_dimension_numbers<[1], [0], [0], [1], [0, 0, 1, 1], [], []>} : vector<8x32xf32>, vector<32x128xf32>, vector<8x128xf32> -> vector<8x128xf32>
    %137 = arith.addf %135, %136 : vector<8x128xf32>
    %138 = arith.negf %137 : vector<8x128xf32>
    %139 = math.exp %138 : vector<8x128xf32>
    %cst_36 = arith.constant 1.000000e+00 : f32
    %140 = vector.broadcast %cst_36 : f32 to vector<8x128xf32>
    %141 = arith.addf %140, %139 : vector<8x128xf32>
    %142 = arith.divf %140, %141 : vector<8x128xf32>
    %143 = vector.extract_strided_slice %142 {offsets = [0, 0], sizes = [8, 32], strides = [1, 1]} : vector<8x128xf32> to vector<8x32xf32>
    %144 = vector.extract_strided_slice %142 {offsets = [0, 32], sizes = [8, 32], strides = [1, 1]} : vector<8x128xf32> to vector<8x32xf32>
    %145 = vector.extract_strided_slice %142 {offsets = [0, 64], sizes = [8, 32], strides = [1, 1]} : vector<8x128xf32> to vector<8x32xf32>
    %cst_37 = arith.constant 2.000000e+00 : f32
    %146 = vector.broadcast %cst_37 : f32 to vector<8x32xf32>
    %147 = arith.mulf %146, %145 : vector<8x32xf32>
    %cst_38 = arith.constant 1.000000e+00 : f32
    %148 = vector.broadcast %cst_38 : f32 to vector<8x32xf32>
    %149 = arith.subf %147, %148 : vector<8x32xf32>
    %150 = vector.extract_strided_slice %142 {offsets = [0, 96], sizes = [8, 32], strides = [1, 1]} : vector<8x128xf32> to vector<8x32xf32>
    %151 = arith.mulf %144, %132 : vector<8x32xf32>
    %152 = arith.mulf %143, %149 : vector<8x32xf32>
    %153 = arith.addf %151, %152 : vector<8x32xf32>
    %154 = math.tanh %153 : vector<8x32xf32>
    %155 = arith.mulf %150, %154 : vector<8x32xf32>
    %156 = vector.extract_strided_slice %5 {offsets = [56, 0], sizes = [8, 128], strides = [1, 1]} : vector<64x128xf32> to vector<8x128xf32>
    %cst_39 = arith.constant dense<0.000000e+00> : vector<8x128xf32>
    %157 = tpu.matmul %155, %6, %cst_39 {dimension_numbers = #tpu.dot_dimension_numbers<[1], [0], [0], [1], [0, 0, 1, 1], [], []>} : vector<8x32xf32>, vector<32x128xf32>, vector<8x128xf32> -> vector<8x128xf32>
    %158 = arith.addf %156, %157 : vector<8x128xf32>
    %159 = arith.negf %158 : vector<8x128xf32>
    %160 = math.exp %159 : vector<8x128xf32>
    %cst_40 = arith.constant 1.000000e+00 : f32
    %161 = vector.broadcast %cst_40 : f32 to vector<8x128xf32>
    %162 = arith.addf %161, %160 : vector<8x128xf32>
    %163 = arith.divf %161, %162 : vector<8x128xf32>
    %164 = vector.extract_strided_slice %163 {offsets = [0, 0], sizes = [8, 32], strides = [1, 1]} : vector<8x128xf32> to vector<8x32xf32>
    %165 = vector.extract_strided_slice %163 {offsets = [0, 32], sizes = [8, 32], strides = [1, 1]} : vector<8x128xf32> to vector<8x32xf32>
    %166 = vector.extract_strided_slice %163 {offsets = [0, 64], sizes = [8, 32], strides = [1, 1]} : vector<8x128xf32> to vector<8x32xf32>
    %cst_41 = arith.constant 2.000000e+00 : f32
    %167 = vector.broadcast %cst_41 : f32 to vector<8x32xf32>
    %168 = arith.mulf %167, %166 : vector<8x32xf32>
    %cst_42 = arith.constant 1.000000e+00 : f32
    %169 = vector.broadcast %cst_42 : f32 to vector<8x32xf32>
    %170 = arith.subf %168, %169 : vector<8x32xf32>
    %171 = vector.extract_strided_slice %163 {offsets = [0, 96], sizes = [8, 32], strides = [1, 1]} : vector<8x128xf32> to vector<8x32xf32>
    %172 = arith.mulf %165, %153 : vector<8x32xf32>
    %173 = arith.mulf %164, %170 : vector<8x32xf32>
    %174 = arith.addf %172, %173 : vector<8x32xf32>
    %175 = math.tanh %174 : vector<8x32xf32>
    %176 = arith.mulf %171, %175 : vector<8x32xf32>
    %c0_43 = arith.constant 0 : index
    %c0_44 = arith.constant 0 : index
    %177 = vector.load %arg10[%c0_43, %c0_44] : memref<8x32xf32, #tpu.memory_space<vmem>>, vector<8x32xf32>
    tpu.vector_store %arg10[%c0_43, %c0_44], %176 {strides = array<i32>} : memref<8x32xf32, #tpu.memory_space<vmem>>, vector<8x32xf32>,
    %c0_45 = arith.constant 0 : index
    %c0_46 = arith.constant 0 : index
    %178 = vector.load %arg11[%c0_45, %c0_46] : memref<8x32xf32, #tpu.memory_space<vmem>>, vector<8x32xf32>
    tpu.vector_store %arg11[%c0_45, %c0_46], %174 {strides = array<i32>} : memref<8x32xf32, #tpu.memory_space<vmem>>, vector<8x32xf32>,
    %179 = tpu.concatenate %29, %50, %71, %92, %113, %134, %155, %176 in 0 : vector<8x32xf32>, vector<8x32xf32>, vector<8x32xf32>, vector<8x32xf32>, vector<8x32xf32>, vector<8x32xf32>, vector<8x32xf32>, vector<8x32xf32> -> vector<64x32xf32>
    %c0_47 = arith.constant 0 : index
    %c0_48 = arith.constant 0 : index
    %180 = vector.load %arg5[%c0_47, %c0_48] : memref<32x128xf32, #tpu.memory_space<vmem>>, vector<32x128xf32>
    %cst_49 = arith.constant dense<0.000000e+00> : vector<64x128xf32>
    %181 = tpu.matmul %179, %180, %cst_49 {dimension_numbers = #tpu.dot_dimension_numbers<[1], [0], [0], [1], [0, 0, 1, 1], [], []>} : vector<64x32xf32>, vector<32x128xf32>, vector<64x128xf32> -> vector<64x128xf32>
    %c0_50 = arith.constant 0 : index
    %c0_51 = arith.constant 0 : index
    %182 = vector.load %arg6[%c0_50, %c0_51] : memref<1x128xf32, #tpu.memory_space<vmem>>, vector<1x128xf32>
    %183 = vector.broadcast %182 : vector<1x128xf32> to vector<64x128xf32>
    %184 = arith.addf %181, %183 : vector<64x128xf32>
    %c0_52 = arith.constant 0 : index
    %c0_53 = arith.constant 0 : index
    %185 = vector.load %arg9[%c0_52, %c0_53] : memref<64x128xf32, #tpu.memory_space<vmem>>, vector<64x128xf32>
    tpu.vector_store %arg9[%c0_52, %c0_53], %184 {strides = array<i32>} : memref<64x128xf32, #tpu.memory_space<vmem>>, vector<64x128xf32>,
    return
  }
  func.func @transform_0(%arg0: i32) -> (i32, i32) {
    %c0_i32 = arith.constant 0 : i32
    %c0_i32_0 = arith.constant 0 : i32
    %c0_i32_1 = arith.constant 0 : i32
    return %c0_i32, %c0_i32_0 : i32, i32
  }
  func.func @transform_1(%arg0: i32) -> (i32, i32) {
    %c0_i32 = arith.constant 0 : i32
    %c0_i32_0 = arith.constant 0 : i32
    %c0_i32_1 = arith.constant 0 : i32
    return %c0_i32, %c0_i32_0 : i32, i32
  }
  func.func @transform_2(%arg0: i32) -> (i32, i32) {
    %c0_i32 = arith.constant 0 : i32
    %c0_i32_0 = arith.constant 0 : i32
    %c0_i32_1 = arith.constant 0 : i32
    return %c0_i32, %c0_i32_0 : i32, i32
  }
  func.func @transform_3(%arg0: i32) -> (i32, i32) {
    %c0_i32 = arith.constant 0 : i32
    %c0_i32_0 = arith.constant 0 : i32
    %c0_i32_1 = arith.constant 0 : i32
    return %c0_i32, %c0_i32_0 : i32, i32
  }
  func.func @transform_4(%arg0: i32) -> (i32, i32) {
    %c0_i32 = arith.constant 0 : i32
    %c0_i32_0 = arith.constant 0 : i32
    %c0_i32_1 = arith.constant 0 : i32
    return %c0_i32, %c0_i32_0 : i32, i32
  }
  func.func @transform_5(%arg0: i32) -> (i32, i32) {
    %c0_i32 = arith.constant 0 : i32
    %c0_i32_0 = arith.constant 0 : i32
    %c0_i32_1 = arith.constant 0 : i32
    return %c0_i32, %c0_i32_0 : i32, i32
  }
  func.func @transform_6(%arg0: i32) -> (i32, i32) {
    %c0_i32 = arith.constant 0 : i32
    %c0_i32_0 = arith.constant 0 : i32
    %c0_i32_1 = arith.constant 0 : i32
    return %c0_i32, %c0_i32_0 : i32, i32
  }
  func.func @transform_7(%arg0: i32) -> (i32, i32) {
    %c0_i32 = arith.constant 0 : i32
    %c0_i32_0 = arith.constant 0 : i32
    %c0_i32_1 = arith.constant 0 : i32
    return %c0_i32, %c0_i32_0 : i32, i32
  }
  func.func @transform_8(%arg0: i32) -> (i32, i32) {
    %c0_i32 = arith.constant 0 : i32
    %c0_i32_0 = arith.constant 0 : i32
    %c0_i32_1 = arith.constant 0 : i32
    return %c0_i32, %c0_i32_0 : i32, i32
  }
  func.func @transform_9(%arg0: i32) -> (i32, i32) {
    %c0_i32 = arith.constant 0 : i32
    %c0_i32_0 = arith.constant 0 : i32
    %c0_i32_1 = arith.constant 0 : i32
    return %c0_i32, %c0_i32_0 : i32, i32
  }
  func.func @transform_10(%arg0: i32) -> (i32, i32) {
    %c0_i32 = arith.constant 0 : i32
    %c0_i32_0 = arith.constant 0 : i32
    %c0_i32_1 = arith.constant 0 : i32
    return %c0_i32, %c0_i32_0 : i32, i32
  }
}

</mosaic_0001>

<bundles_post_ra>
// kernel: tpu_custom_call.1
= control target key start
LH: loop header
LB: loop body
LE: loop exit
PB: predicated region body
PF: predicated region fallthrough
CT: control target
= control target key end

     0   :  { %16 = vsyncpa [#allocation3], 0  ;;  %s1307_s0 = inlined_call_operand.vmem [shape: f32[64,32], index: 0, kind: input, shape index: {}]   ;;  %s1308_s1 = inlined_call_operand.vmem [shape: f32[32,128], index: 1, kind: input, shape index: {}]   ;;  %s1309_s2 = inlined_call_operand.vmem [shape: f32[32,128], index: 2, kind: input, shape index: {}]   ;;  %s1310_s3 = inlined_call_operand.vmem [shape: f32[1,128], index: 3, kind: input, shape index: {}]   ;;  %s1311_s4 = inlined_call_operand.vmem [shape: f32[32,128], index: 4, kind: input, shape index: {}]   ;;  %s1312_s5 = inlined_call_operand.vmem [shape: f32[1,128], index: 5, kind: input, shape index: {}]   ;;  %s1313_s6 = inlined_call_operand.hbm [shape: f32[8,32], index: 6, kind: input, shape index: {}]   ;;  %s1314_s7 = inlined_call_operand.hbm [shape: f32[8,32], index: 7, kind: input, shape index: {}]   ;;  %s1315_s8 = inlined_call_operand.hbm [shape: f32[64,128], index: 8, kind: output, shape index: {0}]   ;;  %s1316_s9 = inlined_call_operand.hbm [shape: f32[8,32], index: 9, kind: output, shape index: {1}]   ;;  %s1317_s10 = inlined_call_operand.hbm [shape: f32[8,32], index: 10, kind: output, shape index: {2}]  }
   0x1   :  { %17 = vsyncpa [#allocation6], 0 }
   0x2   :  { %18 = vsyncpa [#allocation4], 0 }
   0x3   :  { %19 = vsyncpa [#allocation9], 0  ;;  %s37_s15 = sshll.u32 %s1313_s6, 4  ;;  %s1020_s16 = smov [#allocation2]   ;;  %s38_s15 = int_to_ptr.hbm [resolvable:$true] %s37_s15 }
   0x4   :  { %s39_s17 = sshll.u32 %s1020_s16, 4  ;;  %s48_s20 = sshll.u32 %s1314_s7, 4  ;;  %s40_s17 = int_to_ptr.vmem [resolvable:$true] %s39_s17  ;;  %s49_s20 = int_to_ptr.hbm [resolvable:$true] %s48_s20 }
   0x5   :  { %42 = dma.hbm_to_vmem [thread:$0]  %s38_s15, 128, %s40_s17, [#allocation3]  }
   0x6   :  { %s1021_s21 = smov [#allocation5]  }
   0x7   :  { %s50_s22 = sshll.u32 %s1021_s21, 4  ;;  %s51_s22 = int_to_ptr.vmem [resolvable:$true] %s50_s22 }
   0x8   :  { %53 = dma.hbm_to_vmem [thread:$0]  %s49_s20, 128, %s51_s22, [#allocation6]  }
   0x9   :  { %1012 = dma.done.wait [#allocation3], 128  }
   0xa   :  { %1013 = vsyncadd [#allocation3], 4294967168 }
   0xb   :  { %1014 = dma.done.wait [#allocation6], 128  }
   0xc   :  { %1015 = vsyncadd [#allocation6], 4294967168  ;;  %v73_v0 = vld [vmem:[%s1308_s1 + $0x18] sm:$0xff]  ;;  %v72_v1 = vld [vmem:[%s1308_s1 + $0x10] sm:$0xff]  ;;  %vm78_vm0 = vcmask 261120   ;;  %s1023_s23 = smov 32  }
   0xd   :  { %824 = vmatpush.msra.mxu2 %v73_v0  ;;  %v1100_v2 = vld [vmem:[%s1309_s2 + $0x18] sm:$0xff]  ;;  %115 = vmatpush.msra.mxu0 %v73_v0  ;;  %v71_v3 = vld [vmem:[%s1308_s1 + $0x8] sm:$0xff]  ;;  %v1110_v4 = vld [vmem:[%s1309_s2 + $0x10] sm:$0xff]  ;;  %s753_s22 = sshll.u32 %s1316_s9, 4  ;;  %s1027_s7 = smov [#allocation7]   ;;  %s754_s22 = int_to_ptr.hbm [resolvable:$true] %s753_s22 }
   0xe   :  { %297 = vmatpush.msra.mxu3 %v1100_v2  ;;  %361 = vmatpush.msra.mxu1 %v1100_v2  ;;  %v70_v5 = vld [vmem:[%s1308_s1] sm:$0xff]  ;;  %v68_v6 = vld [vmem:[%s1307_s0 + $0x30] sm:$0xff]  ;;  %v1123_v7 = vld [vmem:[%s1309_s2 + $0x8] sm:$0xff]  ;;  %s737_s26 = sshll.u32 %s1027_s7, 4  ;;  %s739_s29 = sshll.u32 %s1315_s8, 4  ;;  %s738_s26 = int_to_ptr.vmem [resolvable:$true] %s737_s26  ;;  %s740_s29 = int_to_ptr.hbm [resolvable:$true] %s739_s29 }
   0xf   :  { %825 = vmatpush.msra.mxu2 %v72_v1  ;;  %116 = vmatpush.msra.mxu0 %v72_v1  ;;  %v62_v8 = vld [vmem:[%s1307_s0] sm:$0xff]  ;;  %v69_v10 = vld [vmem:[%s1307_s0 + $0x38] sm:$0xff]  ;;  %v149_v34 = vld [vmem:[#allocation5] sm:$0xff]  ;;  %s1028_s9 = smov 128   ;;  %s1029_s30 = smov 8  }
  0x10   :  { %298 = vmatpush.msra.mxu3 %v1110_v4  ;;  %362 = vmatpush.msra.mxu1 %v1110_v4  ;;  %v1134_v9 = vld [vmem:[%s1309_s2] sm:$0xff]  ;;  %v63_v44 = vld [vmem:[%s1307_s0 + $0x8] sm:$0xff] }
  0x11   :  { %826 = vmatpush.msra.mxu2 %v71_v3  ;;  %117 = vmatpush.msra.mxu0 %v71_v3  ;;  %v148_v11 = vld [vmem:[#allocation2] sm:$0xff] }
  0x12   :  { %299 = vmatpush.msra.mxu3 %v1123_v7  ;;  %363 = vmatpush.msra.mxu1 %v1123_v7  ;;  %v1171_v15 = vld [vmem:[%s1310_s3] ss:$0 sm:$0xff]  ;;  %s1022_s3 = smov 64  }
  0x13   :  { %827 = vmatpush.msra.mxu2 %v70_v5  ;;  %118 = vmatpush.msra.mxu0 %v70_v5 }
  0x14   :  { %790 = vmatmul.msk.f32.vlgmr.msra.gmra.mxu2 %vm78_vm0, %v68_v6  ;;  %784 = vmatmul.msk.f32.vlgmr.msra.gmra.mxu0 %vm78_vm0, %v62_v8 }
  0x15   :  { %165 = vmatpush.msrb.mxu2 %v1100_v2  ;;  %300 = vmatpush.msra.mxu3 %v1134_v9 }
  0x16   :  { %364 = vmatpush.msra.mxu1 %v1134_v9 }
  0x17   :  { %489 = vmatpush.msrb.mxu3 %v1100_v2  ;;  %166 = vmatpush.msrb.mxu2 %v1110_v4 }
  0x18   :  { %553 = vmatpush.msrb.mxu1 %v1100_v2 }
  0x19   :  { %490 = vmatpush.msrb.mxu3 %v1110_v4  ;;  %167 = vmatpush.msrb.mxu2 %v1123_v7 }
  0x1a   :  { %554 = vmatpush.msrb.mxu1 %v1110_v4 }
  0x1b   :  { %491 = vmatpush.msrb.mxu3 %v1123_v7  ;;  %168 = vmatpush.msrb.mxu2 %v1134_v9 }
  0x1c   :  { %555 = vmatpush.msrb.mxu1 %v1123_v7  ;;  %791 = vmatmul.msk.f32.gmra.mxu2 %vm78_vm0, %v69_v10 }
  0x1d   :  { %492 = vmatpush.msrb.mxu3 %v1134_v9  ;;  %233 = vmatpush.msra.mxu2 %v1100_v2 }
  0x1e   :  { %556 = vmatpush.msrb.mxu1 %v1134_v9  ;;  %785 = vmatmul.msk.f32.gmra.mxu0 %vm78_vm0, %v63_v44 }
  0x1f   :  { %234 = vmatpush.msra.mxu2 %v1110_v4 }
  0x21   :  { %235 = vmatpush.msra.mxu2 %v1123_v7 }
  0x23   :  { %236 = vmatpush.msra.mxu2 %v1134_v9 }
  0x24   :  { %792 = vmatmul.msk.f32.vlgmr.msrb.gmra.mxu2 %vm78_vm0, %v148_v11 }
  0x25   :  { %425 = vmatpush.msrb.mxu2 %v1100_v2 }
  0x27   :  { %426 = vmatpush.msrb.mxu2 %v1110_v4 }
  0x29   :  { %427 = vmatpush.msrb.mxu2 %v1123_v7 }
  0x2b   :  { %428 = vmatpush.msrb.mxu2 %v1134_v9 }
  0x91   :  { %v120_v14 = vpop.f32.mrf.mxu0 }
  0x92   :  { %v121_v16 = vadd.f32 %v1171_v15, %v120_v14 }
  0x97   :  { %v1164_v12 = vpop.f32.mrf.mxu2 }
  0x9b   :  { %v123_v46 = vpop.f32.mrf.mxu0 }
  0x9c   :  { %v124_v47 = vadd.f32 %v1171_v15, %v123_v46 }
  0x9f   :  { %v1166_v13 = vpop.f32.mrf.mxu2 }
  0xa7   :  { %v170_v17 = vpop.f32.mrf.mxu2 }
  0xa8   :  { %v173_v18 = vadd.f32 %v170_v17, %v121_v16 }
  0xaa   :  { %v793_v19 = vmul.f32 -1.442695, %v173_v18 }
  0xac   :  { %844 = vpow2.f32 %v793_v19 }
  0xb2   :  { %v845_v20 = vpop.eup %844 }
  0xb3   :  { %v177_v21 = vadd.f32 1.0, %v845_v20 }
  0xb5   :  { %846 = vrcp.f32 %v177_v21  ;;  %v189_v25 = vand.u32 2147483648, %v177_v21  ;;  %v187_v27 = vand.u32 2147483647, %v177_v21  ;;  %vm183_vm2 = vweird.f32 %v177_v21 }
  0xb7   :  { %v190_v29 = vor.u32 1.1754944e-38, %v189_v25  ;;  %vm188_vm4 = vcmp.eq.f32.partialorder %v187_v27, 8.507059e+37 }
  0xbb   :  { %v847_v22 = vpop.eup %846 }
  0xbc   :  { %v179_v23 = vmul.f32 %v847_v22, %v177_v21  ;;  %vm184_vm1 = vweird.f32 %v847_v22 }
  0xbd   :  { %vm185_vm3 = vmor %vm183_vm2, %vm184_vm1 }
  0xbe   :  { %v180_v24 = vsub.f32 1.0, %v179_v23 }
  0xc0   :  { %v181_v26 = vmul.f32 %v847_v22, %v180_v24 }
  0xc2   :  { %v182_v28 = vadd.f32 %v847_v22, %v181_v26 }
  0xc4   :  { %v186_v30 = vsel %vm185_vm3, %v847_v22, %v182_v28 }
  0xc5   :  { %v191_v31 = vsel %vm188_vm4, %v190_v29, %v186_v30 }
  0xc6   :  { %v193_v32 = vmul.f32 2.0, %v191_v31 }
  0xc8   :  { %v794_v33 = vadd.f32 -1.0, %v193_v32 }
  0xca   :  { %201 = vrot.lane.b32.xlu0 %v794_v33, %s1022_s3 }
  0xd2   :  { %196 = vrot.lane.b32.xlu0 %v149_v34, %s1023_s23 }
 0x13c   :  { %v202_v35 = vpop.permute.xlu0 %201 }
 0x13d   :  { %v204_v36 = vmul.f32 %v202_v35, %v191_v31 }
 0x13f   :  { %206 = vrot.lane.b32.xlu1 %v204_v36, %s1023_s23 }
 0x144   :  { %v197_v37 = vpop.permute.xlu0 %196 }
 0x145   :  { %v199_v38 = vmul.f32 %v197_v37, %v191_v31 }
 0x1b1   :  { %v207_v39 = vpop.permute.xlu1 %206 }
 0x1b2   :  { %v209_v40 = vadd.f32 %v207_v39, %v199_v38  ;;  %v65_v39 = vld [vmem:[%s1307_s0 + $0x18] sm:$0xff] }
 0x1b4   :  { %848 = vtanh.f32 %v209_v40 }
 0x1ba   :  { %v849_v41 = vpop.eup %848 }
 0x1bb   :  { %212 = vrot.lane.b32.xlu1 %v849_v41, %s1022_s3 }
 0x22d   :  { %v213_v42 = vpop.permute.xlu1 %212 }
 0x22e   :  { %v215_v43 = vmul.f32 %v213_v42, %v191_v31 }
 0x230   :  { %217 = vrot.lane.b32.xlu2 %v215_v43, %s1023_s23 }
 0x28a   :  { %v1183_v45 = vpop.permute.xlu2 %217 }
 0x28b   :  { %795 = vmatmul.msk.f32.vlgmr.msra.gmra.mxu2 %vm78_vm0, %v1183_v45 }
 0x28c   :  { %617 = vmatpush.msra.mxu2 %v1100_v2 }
 0x28e   :  { %618 = vmatpush.msra.mxu2 %v1110_v4 }
 0x290   :  { %619 = vmatpush.msra.mxu2 %v1123_v7 }
 0x292   :  { %620 = vmatpush.msra.mxu2 %v1134_v9  ;;  %v64_v9 = vld [vmem:[%s1307_s0 + $0x10] sm:$0xff] }
 0x293   :  { %786 = vmatmul.msk.f32.gmra.mxu0 %vm78_vm0, %v64_v9 }
 0x29b   :  { %787 = vmatmul.msk.f32.gmra.mxu0 %vm78_vm0, %v65_v39 }
 0x30e   :  { %v238_v48 = vpop.f32.mrf.mxu2 }
 0x30f   :  { %v241_v49 = vadd.f32 %v238_v48, %v124_v47 }
 0x310   :  { %v126_v11 = vpop.f32.mrf.mxu0 }
 0x311   :  { %v796_v50 = vmul.f32 -1.442695, %v241_v49  ;;  %v127_v14 = vadd.f32 %v1171_v15, %v126_v11 }
 0x313   :  { %850 = vpow2.f32 %v796_v50 }
 0x318   :  { %v129_v43 = vpop.f32.mrf.mxu0 }
 0x319   :  { %v851_v51 = vpop.eup %850  ;;  %v130_v44 = vadd.f32 %v1171_v15, %v129_v43  ;;  %v67_v43 = vld [vmem:[%s1307_s0 + $0x28] sm:$0xff] }
 0x31a   :  { %v245_v52 = vadd.f32 1.0, %v851_v51 }
 0x31c   :  { %852 = vrcp.f32 %v245_v52  ;;  %v257_v56 = vand.u32 2147483648, %v245_v52  ;;  %v255_v58 = vand.u32 2147483647, %v245_v52  ;;  %vm251_vm6 = vweird.f32 %v245_v52 }
 0x31e   :  { %v258_v60 = vor.u32 1.1754944e-38, %v257_v56  ;;  %vm256_vm8 = vcmp.eq.f32.partialorder %v255_v58, 8.507059e+37 }
 0x322   :  { %v853_v53 = vpop.eup %852 }
 0x323   :  { %v247_v54 = vmul.f32 %v853_v53, %v245_v52  ;;  %vm252_vm5 = vweird.f32 %v853_v53 }
 0x324   :  { %vm253_vm7 = vmor %vm251_vm6, %vm252_vm5 }
 0x325   :  { %v248_v55 = vsub.f32 1.0, %v247_v54 }
 0x327   :  { %v249_v57 = vmul.f32 %v853_v53, %v248_v55 }
 0x329   :  { %v250_v59 = vadd.f32 %v853_v53, %v249_v57 }
 0x32b   :  { %v254_v61 = vsel %vm253_vm7, %v853_v53, %v250_v59 }
 0x32c   :  { %v259_v62 = vsel %vm256_vm8, %v258_v60, %v254_v61 }
 0x32d   :  { %v261_v63 = vmul.f32 2.0, %v259_v62  ;;  %v263_v3 = vmul.f32 %v259_v62, %v209_v40 }
 0x32f   :  { %v797_v0 = vadd.f32 -1.0, %v261_v63 }
 0x331   :  { %265 = vrot.lane.b32.xlu2 %v797_v0, %s1022_s3 }
 0x38b   :  { %v266_v1 = vpop.permute.xlu2 %265 }
 0x38c   :  { %v268_v2 = vmul.f32 %v266_v1, %v259_v62 }
 0x38e   :  { %270 = vrot.lane.b32.xlu0 %v268_v2, %s1023_s23 }
 0x400   :  { %v271_v4 = vpop.permute.xlu0 %270 }
 0x401   :  { %v273_v5 = vadd.f32 %v271_v4, %v263_v3 }
 0x403   :  { %854 = vtanh.f32 %v273_v5 }
 0x409   :  { %v855_v6 = vpop.eup %854 }
 0x40a   :  { %276 = vrot.lane.b32.xlu1 %v855_v6, %s1022_s3 }
 0x47c   :  { %v277_v7 = vpop.permute.xlu1 %276 }
 0x47d   :  { %v279_v8 = vmul.f32 %v277_v7, %v259_v62  ;;  %v66_v7 = vld [vmem:[%s1307_s0 + $0x20] sm:$0xff] }
 0x47e   :  { %788 = vmatmul.msk.f32.gmra.mxu0 %vm78_vm0, %v66_v7 }
 0x47f   :  { %281 = vrot.lane.b32.xlu2 %v279_v8, %s1023_s23 }
 0x486   :  { %789 = vmatmul.msk.f32.gmra.mxu0 %vm78_vm0, %v67_v43 }
 0x4d9   :  { %v1200_v10 = vpop.permute.xlu2 %281 }
 0x4da   :  { %798 = vmatmul.msk.f32.vlgmr.msra.gmra.mxu3 %vm78_vm0, %v1200_v10 }
 0x4fb   :  { %v132_v9 = vpop.f32.mrf.mxu0 }
 0x4fc   :  { %v133_v11 = vadd.f32 %v1171_v15, %v132_v9 }
 0x55d   :  { %v302_v16 = vpop.f32.mrf.mxu3 }
 0x55e   :  { %v305_v17 = vadd.f32 %v302_v16, %v127_v14 }
 0x560   :  { %v799_v18 = vmul.f32 -1.442695, %v305_v17 }
 0x562   :  { %856 = vpow2.f32 %v799_v18 }
 0x568   :  { %v857_v19 = vpop.eup %856 }
 0x569   :  { %v309_v20 = vadd.f32 1.0, %v857_v19 }
 0x56b   :  { %858 = vrcp.f32 %v309_v20  ;;  %v321_v24 = vand.u32 2147483648, %v309_v20  ;;  %v319_v26 = vand.u32 2147483647, %v309_v20  ;;  %vm315_vm10 = vweird.f32 %v309_v20 }
 0x56d   :  { %v322_v28 = vor.u32 1.1754944e-38, %v321_v24  ;;  %vm320_vm12 = vcmp.eq.f32.partialorder %v319_v26, 8.507059e+37 }
 0x571   :  { %v859_v21 = vpop.eup %858 }
 0x572   :  { %v311_v22 = vmul.f32 %v859_v21, %v309_v20  ;;  %vm316_vm9 = vweird.f32 %v859_v21 }
 0x573   :  { %vm317_vm11 = vmor %vm315_vm10, %vm316_vm9 }
 0x574   :  { %v312_v23 = vsub.f32 1.0, %v311_v22 }
 0x576   :  { %v313_v25 = vmul.f32 %v859_v21, %v312_v23 }
 0x578   :  { %v314_v27 = vadd.f32 %v859_v21, %v313_v25 }
 0x57a   :  { %v318_v29 = vsel %vm317_vm11, %v859_v21, %v314_v27 }
 0x57b   :  { %v323_v30 = vsel %vm320_vm12, %v322_v28, %v318_v29 }
 0x57c   :  { %v325_v31 = vmul.f32 2.0, %v323_v30  ;;  %v327_v35 = vmul.f32 %v323_v30, %v273_v5 }
 0x57e   :  { %v800_v32 = vadd.f32 -1.0, %v325_v31 }
 0x580   :  { %329 = vrot.lane.b32.xlu0 %v800_v32, %s1022_s3 }
 0x5f2   :  { %v330_v33 = vpop.permute.xlu0 %329 }
 0x5f3   :  { %v332_v34 = vmul.f32 %v330_v33, %v323_v30 }
 0x5f5   :  { %334 = vrot.lane.b32.xlu1 %v332_v34, %s1023_s23 }
 0x667   :  { %v335_v36 = vpop.permute.xlu1 %334 }
 0x668   :  { %v337_v37 = vadd.f32 %v335_v36, %v327_v35 }
 0x66a   :  { %860 = vtanh.f32 %v337_v37 }
 0x670   :  { %v861_v38 = vpop.eup %860 }
 0x671   :  { %340 = vrot.lane.b32.xlu2 %v861_v38, %s1022_s3 }
 0x6cb   :  { %v341_v40 = vpop.permute.xlu2 %340 }
 0x6cc   :  { %v343_v41 = vmul.f32 %v341_v40, %v323_v30  ;;  %v677_v40 = vld [vmem:[%s1311_s4 + $0x18] sm:$0xff] }
 0x6cd   :  { %828 = vmatpush.msra.mxu3 %v677_v40 }
 0x6ce   :  { %345 = vrot.lane.b32.xlu0 %v343_v41, %s1023_s23  ;;  %v676_v41 = vld [vmem:[%s1311_s4 + $0x10] sm:$0xff] }
 0x6cf   :  { %829 = vmatpush.msra.mxu3 %v676_v41 }
 0x740   :  { %v1213_v42 = vpop.permute.xlu0 %345 }
 0x741   :  { %801 = vmatmul.msk.f32.vlgmr.msra.gmra.mxu1 %vm78_vm0, %v1213_v42 }
 0x742   :  { %696 = vmatpush.msra.mxu1 %v677_v40 }
 0x744   :  { %697 = vmatpush.msra.mxu1 %v676_v41 }
 0x7be   :  { %v366_v46 = vpop.f32.mrf.mxu1 }
 0x7bf   :  { %v369_v47 = vadd.f32 %v366_v46, %v130_v44  ;;  %v675_v44 = vld [vmem:[%s1311_s4 + $0x8] sm:$0xff]  ;;  %v674_v46 = vld [vmem:[%s1311_s4] sm:$0xff]  ;;  %s1024_s4 = smov 96  }
 0x7c0   :  { %830 = vmatpush.msra.mxu3 %v675_v44  ;;  %698 = vmatpush.msra.mxu1 %v675_v44 }
 0x7c1   :  { %v802_v48 = vmul.f32 -1.442695, %v369_v47 }
 0x7c2   :  { %831 = vmatpush.msra.mxu3 %v674_v46  ;;  %699 = vmatpush.msra.mxu1 %v674_v46 }
 0x7c3   :  { %862 = vpow2.f32 %v802_v48  ;;  %v135_v48 = vpop.f32.mrf.mxu0 }
 0x7c9   :  { %v863_v49 = vpop.eup %862 }
 0x7ca   :  { %v373_v50 = vadd.f32 1.0, %v863_v49  ;;  %v136_v49 = vadd.f32 %v1171_v15, %v135_v48 }
 0x7cc   :  { %864 = vrcp.f32 %v373_v50  ;;  %v385_v54 = vand.u32 2147483648, %v373_v50  ;;  %v383_v56 = vand.u32 2147483647, %v373_v50  ;;  %vm379_vm14 = vweird.f32 %v373_v50 }
 0x7ce   :  { %v386_v58 = vor.u32 1.1754944e-38, %v385_v54  ;;  %vm384_vm1 = vcmp.eq.f32.partialorder %v383_v56, 8.507059e+37 }
 0x7d2   :  { %v865_v51 = vpop.eup %864 }
 0x7d3   :  { %v375_v52 = vmul.f32 %v865_v51, %v373_v50  ;;  %vm380_vm13 = vweird.f32 %v865_v51 }
 0x7d4   :  { %vm381_vm15 = vmor %vm379_vm14, %vm380_vm13 }
 0x7d5   :  { %v376_v53 = vsub.f32 1.0, %v375_v52 }
 0x7d7   :  { %v377_v55 = vmul.f32 %v865_v51, %v376_v53  ;;  %v1257_v53 = vld [vmem:[%s1312_s5] ss:$0 sm:$0xff]  ;;  %s1025_s5 = smov [#allocation8]  }
 0x7d8   :  { %s751_s20 = sshll.u32 %s1025_s5, 4  ;;  %s752_s20 = int_to_ptr.vmem [resolvable:$true] %s751_s20 }
 0x7d9   :  { %v378_v57 = vadd.f32 %v865_v51, %v377_v55 }
 0x7db   :  { %v382_v59 = vsel %vm381_vm15, %v865_v51, %v378_v57 }
 0x7dc   :  { %v387_v60 = vsel %vm384_vm1, %v386_v58, %v382_v59 }
 0x7dd   :  { %v389_v61 = vmul.f32 2.0, %v387_v60  ;;  %v391_v1 = vmul.f32 %v387_v60, %v337_v37 }
 0x7df   :  { %v803_v62 = vadd.f32 -1.0, %v389_v61 }
 0x7e1   :  { %393 = vrot.lane.b32.xlu1 %v803_v62, %s1022_s3 }
 0x853   :  { %v394_v63 = vpop.permute.xlu1 %393 }
 0x854   :  { %v396_v0 = vmul.f32 %v394_v63, %v387_v60 }
 0x856   :  { %398 = vrot.lane.b32.xlu2 %v396_v0, %s1023_s23 }
 0x8b0   :  { %v399_v2 = vpop.permute.xlu2 %398 }
 0x8b1   :  { %v401_v3 = vadd.f32 %v399_v2, %v391_v1 }
 0x8b3   :  { %866 = vtanh.f32 %v401_v3 }
 0x8b9   :  { %v867_v4 = vpop.eup %866 }
 0x8ba   :  { %404 = vrot.lane.b32.xlu0 %v867_v4, %s1022_s3 }
 0x92c   :  { %v405_v5 = vpop.permute.xlu0 %404 }
 0x92d   :  { %v407_v6 = vmul.f32 %v405_v5, %v387_v60 }
 0x92f   :  { %409 = vrot.lane.b32.xlu1 %v407_v6, %s1023_s23 }
 0x9a1   :  { %v1226_v8 = vpop.permute.xlu1 %409 }
 0x9a2   :  { %804 = vmatmul.msk.f32.vlgmr.msrb.gmra.mxu2 %vm78_vm0, %v1226_v8 }
 0xa25   :  { %v430_v14 = vpop.f32.mrf.mxu2 }
 0xa26   :  { %v433_v16 = vadd.f32 %v430_v14, %v133_v11 }
 0xa28   :  { %v805_v17 = vmul.f32 -1.442695, %v433_v16 }
 0xa2a   :  { %868 = vpow2.f32 %v805_v17 }
 0xa30   :  { %v869_v18 = vpop.eup %868 }
 0xa31   :  { %v437_v19 = vadd.f32 1.0, %v869_v18 }
 0xa33   :  { %870 = vrcp.f32 %v437_v19  ;;  %v449_v23 = vand.u32 2147483648, %v437_v19  ;;  %v447_v25 = vand.u32 2147483647, %v437_v19  ;;  %vm443_vm3 = vweird.f32 %v437_v19 }
 0xa35   :  { %v450_v27 = vor.u32 1.1754944e-38, %v449_v23  ;;  %vm448_vm5 = vcmp.eq.f32.partialorder %v447_v25, 8.507059e+37 }
 0xa39   :  { %v871_v20 = vpop.eup %870 }
 0xa3a   :  { %v439_v21 = vmul.f32 %v871_v20, %v437_v19  ;;  %vm444_vm2 = vweird.f32 %v871_v20 }
 0xa3b   :  { %vm445_vm4 = vmor %vm443_vm3, %vm444_vm2 }
 0xa3c   :  { %v440_v22 = vsub.f32 1.0, %v439_v21 }
 0xa3e   :  { %v441_v24 = vmul.f32 %v871_v20, %v440_v22 }
 0xa40   :  { %v442_v26 = vadd.f32 %v871_v20, %v441_v24 }
 0xa42   :  { %v446_v28 = vsel %vm445_vm4, %v871_v20, %v442_v26  ;;  %v139_v20 = vadd.f32 %v1171_v15, %v1164_v12 }
 0xa43   :  { %v451_v29 = vsel %vm448_vm5, %v450_v27, %v446_v28 }
 0xa44   :  { %v453_v30 = vmul.f32 2.0, %v451_v29  ;;  %v455_v34 = vmul.f32 %v451_v29, %v401_v3 }
 0xa46   :  { %v806_v31 = vadd.f32 -1.0, %v453_v30 }
 0xa48   :  { %457 = vrot.lane.b32.xlu2 %v806_v31, %s1022_s3 }
 0xaa2   :  { %v458_v32 = vpop.permute.xlu2 %457 }
 0xaa3   :  { %v460_v33 = vmul.f32 %v458_v32, %v451_v29 }
 0xaa5   :  { %462 = vrot.lane.b32.xlu0 %v460_v33, %s1023_s23 }
 0xb17   :  { %v463_v35 = vpop.permute.xlu0 %462 }
 0xb18   :  { %v465_v36 = vadd.f32 %v463_v35, %v455_v34 }
 0xb1a   :  { %872 = vtanh.f32 %v465_v36 }
 0xb20   :  { %v873_v37 = vpop.eup %872 }
 0xb21   :  { %468 = vrot.lane.b32.xlu1 %v873_v37, %s1022_s3 }
 0xb93   :  { %v469_v38 = vpop.permute.xlu1 %468 }
 0xb94   :  { %v471_v39 = vmul.f32 %v469_v38, %v451_v29 }
 0xb96   :  { %473 = vrot.lane.b32.xlu2 %v471_v39, %s1023_s23 }
 0xbf0   :  { %v474_v47 = vpop.permute.xlu2 %473 }
 0xbf1   :  { %807 = vmatmul.msk.f32.vlgmr.msrb.gmra.mxu3 %vm78_vm0, %v474_v47 }
 0xbf9   :  { %820 = vmatmul.msk.f32.vlgmr.msra.gmra.mxu3 %vm78_vm0, %v474_v47 }
 0xc74   :  { %v494_v50 = vpop.f32.mrf.mxu3 }
 0xc75   :  { %v497_v51 = vadd.f32 %v494_v50, %v136_v49 }
 0xc77   :  { %v808_v52 = vmul.f32 -1.442695, %v497_v51 }
 0xc79   :  { %874 = vpow2.f32 %v808_v52 }
 0xc7c   :  { %v713_v54 = vpop.f32.mrf.mxu3 }
 0xc7d   :  { %v714_v55 = vadd.f32 %v1257_v53, %v713_v54 }
 0xc7f   :  { %v875_v56 = vpop.eup %874  ;;  %729 = vst [vmem:[#allocation7 + $0x20] sm:$0xff] %v714_v55  ;;  %v142_v55 = vadd.f32 %v1171_v15, %v1166_v13 }
 0xc80   :  { %v501_v57 = vadd.f32 1.0, %v875_v56 }
 0xc82   :  { %876 = vrcp.f32 %v501_v57  ;;  %v513_v61 = vand.u32 2147483648, %v501_v57  ;;  %v511_v63 = vand.u32 2147483647, %v501_v57  ;;  %vm507_vm7 = vweird.f32 %v501_v57 }
 0xc84   :  { %v514_v1 = vor.u32 1.1754944e-38, %v513_v61  ;;  %vm512_vm9 = vcmp.eq.f32.partialorder %v511_v63, 8.507059e+37 }
 0xc88   :  { %v877_v58 = vpop.eup %876 }
 0xc89   :  { %v503_v59 = vmul.f32 %v877_v58, %v501_v57  ;;  %vm508_vm6 = vweird.f32 %v877_v58 }
 0xc8a   :  { %vm509_vm8 = vmor %vm507_vm7, %vm508_vm6 }
 0xc8b   :  { %v504_v60 = vsub.f32 1.0, %v503_v59 }
 0xc8d   :  { %v505_v62 = vmul.f32 %v877_v58, %v504_v60 }
 0xc8f   :  { %v506_v0 = vadd.f32 %v877_v58, %v505_v62 }
 0xc91   :  { %v510_v2 = vsel %vm509_vm8, %v877_v58, %v506_v0 }
 0xc92   :  { %v515_v3 = vsel %vm512_vm9, %v514_v1, %v510_v2 }
 0xc93   :  { %v517_v4 = vmul.f32 2.0, %v515_v3  ;;  %v519_v9 = vmul.f32 %v515_v3, %v465_v36 }
 0xc95   :  { %v809_v5 = vadd.f32 -1.0, %v517_v4 }
 0xc97   :  { %521 = vrot.lane.b32.xlu0 %v809_v5, %s1022_s3 }
 0xd09   :  { %v522_v6 = vpop.permute.xlu0 %521 }
 0xd0a   :  { %v524_v7 = vmul.f32 %v522_v6, %v515_v3 }
 0xd0c   :  { %526 = vrot.lane.b32.xlu1 %v524_v7, %s1023_s23 }
 0xd7e   :  { %v527_v11 = vpop.permute.xlu1 %526 }
 0xd7f   :  { %v529_v14 = vadd.f32 %v527_v11, %v519_v9 }
 0xd81   :  { %878 = vtanh.f32 %v529_v14 }
 0xd87   :  { %v879_v16 = vpop.eup %878 }
 0xd88   :  { %532 = vrot.lane.b32.xlu2 %v879_v16, %s1022_s3 }
 0xde2   :  { %v533_v17 = vpop.permute.xlu2 %532 }
 0xde3   :  { %v535_v18 = vmul.f32 %v533_v17, %v515_v3 }
 0xde5   :  { %537 = vrot.lane.b32.xlu0 %v535_v18, %s1023_s23 }
 0xe57   :  { %v538_v19 = vpop.permute.xlu0 %537 }
 0xe58   :  { %810 = vmatmul.msk.f32.vlgmr.msrb.gmra.mxu1 %vm78_vm0, %v538_v19  ;;  %821 = vmatmul.msk.f32.gmra.mxu3 %vm78_vm0, %v538_v19 }
 0xe60   :  { %816 = vmatmul.msk.f32.vlgmr.msra.gmra.mxu1 %vm78_vm0, %v1183_v45 }
 0xe68   :  { %817 = vmatmul.msk.f32.gmra.mxu1 %vm78_vm0, %v1200_v10 }
 0xe70   :  { %818 = vmatmul.msk.f32.gmra.mxu1 %vm78_vm0, %v1213_v42 }
 0xe78   :  { %819 = vmatmul.msk.f32.gmra.mxu1 %vm78_vm0, %v1226_v8 }
 0xed5   :  { %v558_v21 = vpop.f32.mrf.mxu1 }
 0xed6   :  { %v561_v22 = vadd.f32 %v558_v21, %v139_v20 }
 0xed8   :  { %v811_v23 = vmul.f32 -1.442695, %v561_v22 }
 0xeda   :  { %880 = vpow2.f32 %v811_v23 }
 0xedb   :  { %v716_v24 = vpop.f32.mrf.mxu3 }
 0xedc   :  { %v717_v25 = vadd.f32 %v1257_v53, %v716_v24 }
 0xedd   :  { %v701_v45 = vpop.f32.mrf.mxu1 }
 0xede   :  { %730 = vst [vmem:[#allocation7 + $0x28] sm:$0xff] %v717_v25  ;;  %v702_v10 = vadd.f32 %v1257_v53, %v701_v45 }
 0xee0   :  { %v881_v26 = vpop.eup %880  ;;  %725 = vst [vmem:[#allocation7] sm:$0xff] %v702_v10 }
 0xee1   :  { %v565_v42 = vadd.f32 1.0, %v881_v26 }
 0xee3   :  { %882 = vrcp.f32 %v565_v42  ;;  %v577_v31 = vand.u32 2147483648, %v565_v42  ;;  %v575_v34 = vand.u32 2147483647, %v565_v42  ;;  %vm571_vm11 = vweird.f32 %v565_v42 }
 0xee5   :  { %v704_v27 = vpop.f32.mrf.mxu1  ;;  %v578_v36 = vor.u32 1.1754944e-38, %v577_v31  ;;  %vm576_vm13 = vcmp.eq.f32.partialorder %v575_v34, 8.507059e+37 }
 0xee6   :  { %v705_v8 = vadd.f32 %v1257_v53, %v704_v27 }
 0xee8   :  { %726 = vst [vmem:[#allocation7 + $0x8] sm:$0xff] %v705_v8 }
 0xee9   :  { %v883_v12 = vpop.eup %882 }
 0xeea   :  { %v567_v28 = vmul.f32 %v883_v12, %v565_v42  ;;  %vm572_vm10 = vweird.f32 %v883_v12 }
 0xeeb   :  { %vm573_vm12 = vmor %vm571_vm11, %vm572_vm10 }
 0xeec   :  { %v568_v29 = vsub.f32 1.0, %v567_v28 }
 0xeed   :  { %v707_v30 = vpop.f32.mrf.mxu1 }
 0xeee   :  { %v708_v32 = vadd.f32 %v1257_v53, %v707_v30  ;;  %v569_v33 = vmul.f32 %v883_v12, %v568_v29 }
 0xef0   :  { %727 = vst [vmem:[#allocation7 + $0x10] sm:$0xff] %v708_v32  ;;  %v570_v35 = vadd.f32 %v883_v12, %v569_v33 }
 0xef2   :  { %v574_v37 = vsel %vm573_vm12, %v883_v12, %v570_v35 }
 0xef3   :  { %v579_v38 = vsel %vm576_vm13, %v578_v36, %v574_v37 }
 0xef4   :  { %v581_v39 = vmul.f32 2.0, %v579_v38  ;;  %v583_v47 = vmul.f32 %v579_v38, %v529_v14 }
 0xef5   :  { %v710_v40 = vpop.f32.mrf.mxu1 }
 0xef6   :  { %v711_v41 = vadd.f32 %v1257_v53, %v710_v40  ;;  %v812_v43 = vadd.f32 -1.0, %v581_v39 }
 0xef8   :  { %728 = vst [vmem:[#allocation7 + $0x18] sm:$0xff] %v711_v41  ;;  %585 = vrot.lane.b32.xlu1 %v812_v43, %s1022_s3 }
 0xf6a   :  { %v586_v44 = vpop.permute.xlu1 %585 }
 0xf6b   :  { %v588_v46 = vmul.f32 %v586_v44, %v579_v38 }
 0xf6d   :  { %590 = vrot.lane.b32.xlu2 %v588_v46, %s1023_s23 }
 0xfc7   :  { %v591_v48 = vpop.permute.xlu2 %590 }
 0xfc8   :  { %v593_v49 = vadd.f32 %v591_v48, %v583_v47 }
 0xfca   :  { %884 = vtanh.f32 %v593_v49 }
 0xfd0   :  { %v885_v50 = vpop.eup %884 }
 0xfd1   :  { %596 = vrot.lane.b32.xlu0 %v885_v50, %s1022_s3 }
0x1043   :  { %v597_v51 = vpop.permute.xlu0 %596 }
0x1044   :  { %v599_v52 = vmul.f32 %v597_v51, %v579_v38 }
0x1046   :  { %601 = vrot.lane.b32.xlu1 %v599_v52, %s1023_s23 }
0x10b8   :  { %v602_v54 = vpop.permute.xlu1 %601 }
0x10b9   :  { %813 = vmatmul.msk.f32.vlgmr.msra.gmra.mxu2 %vm78_vm0, %v602_v54  ;;  %822 = vmatmul.msk.f32.gmra.mxu3 %vm78_vm0, %v602_v54 }
0x113c   :  { %v622_v56 = vpop.f32.mrf.mxu2  ;;  %v719_v57 = vpop.f32.mrf.mxu3 }
0x113d   :  { %v625_v58 = vadd.f32 %v622_v56, %v142_v55  ;;  %v720_v59 = vadd.f32 %v1257_v53, %v719_v57 }
0x113f   :  { %v814_v60 = vmul.f32 -1.442695, %v625_v58  ;;  %731 = vst [vmem:[#allocation7 + $0x30] sm:$0xff] %v720_v59 }
0x1141   :  { %886 = vpow2.f32 %v814_v60 }
0x1147   :  { %v887_v61 = vpop.eup %886 }
0x1148   :  { %v629_v62 = vadd.f32 1.0, %v887_v61 }
0x114a   :  { %888 = vrcp.f32 %v629_v62  ;;  %v641_v2 = vand.u32 2147483648, %v629_v62  ;;  %v639_v4 = vand.u32 2147483647, %v629_v62  ;;  %vm635_vm15 = vweird.f32 %v629_v62 }
0x114c   :  { %v642_v13 = vor.u32 1.1754944e-38, %v641_v2  ;;  %vm640_vm2 = vcmp.eq.f32.partialorder %v639_v4, 8.507059e+37 }
0x1150   :  { %v889_v63 = vpop.eup %888 }
0x1151   :  { %v631_v0 = vmul.f32 %v889_v63, %v629_v62  ;;  %vm636_vm14 = vweird.f32 %v889_v63 }
0x1152   :  { %vm637_vm1 = vmor %vm635_vm15, %vm636_vm14 }
0x1153   :  { %v632_v1 = vsub.f32 1.0, %v631_v0 }
0x1155   :  { %v633_v3 = vmul.f32 %v889_v63, %v632_v1 }
0x1157   :  { %v634_v5 = vadd.f32 %v889_v63, %v633_v3 }
0x1159   :  { %v638_v15 = vsel %vm637_vm1, %v889_v63, %v634_v5 }
0x115a   :  { %v643_v6 = vsel %vm640_vm2, %v642_v13, %v638_v15 }
0x115b   :  { %v645_v7 = vmul.f32 2.0, %v643_v6  ;;  %v647_v16 = vmul.f32 %v643_v6, %v593_v49 }
0x115d   :  { %v815_v9 = vadd.f32 -1.0, %v645_v7 }
0x115f   :  { %649 = vrot.lane.b32.xlu2 %v815_v9, %s1022_s3 }
0x11b9   :  { %v650_v11 = vpop.permute.xlu2 %649 }
0x11ba   :  { %v652_v14 = vmul.f32 %v650_v11, %v643_v6 }
0x11bc   :  { %654 = vrot.lane.b32.xlu0 %v652_v14, %s1023_s23 }
0x122e   :  { %v655_v17 = vpop.permute.xlu0 %654 }
0x122f   :  { %v657_v18 = vadd.f32 %v655_v17, %v647_v16 }
0x1231   :  { %890 = vtanh.f32 %v657_v18  ;;  %670 = vrot.lane.b32.xlu0 %v657_v18, %s1024_s4 }
0x1237   :  { %v891_v19 = vpop.eup %890 }
0x1238   :  { %660 = vrot.lane.b32.xlu1 %v891_v19, %s1022_s3  ;;  %s1026_s3 = smov [#allocation10]  }
0x1239   :  { %s762_s6 = sshll.u32 %s1026_s3, 4  ;;  %s763_s6 = int_to_ptr.vmem [resolvable:$true] %s762_s6 }
0x12a3   :  { %v671_v20 = vpop.permute.xlu0 %670 }
0x12a4   :  { %673 = vst.msk [vmem:[#allocation10] sm:$0xff] %vm78_vm0, %v671_v20 }
0x12aa   :  { %v661_v21 = vpop.permute.xlu1 %660 }
0x12ab   :  { %v663_v22 = vmul.f32 %v661_v21, %v643_v6 }
0x12ad   :  { %665 = vrot.lane.b32.xlu2 %v663_v22, %s1023_s23  ;;  %s764_s23 = sshll.u32 %s1317_s10, 4  ;;  %s765_s23 = int_to_ptr.hbm [resolvable:$true] %s764_s23 }
0x1307   :  { %v666_v23 = vpop.permute.xlu2 %665 }
0x1308   :  { %668 = vst.msk [vmem:[#allocation8] sm:$0xff] %vm78_vm0, %v666_v23  ;;  %823 = vmatmul.msk.f32.gmra.mxu3 %vm78_vm0, %v666_v23 }
0x1309   :  { %756 = dma.vmem_to_hbm [thread:$0]  %s752_s20, 128, %s754_s22, [#allocation9]  }
0x130a   :  { %767 = dma.vmem_to_hbm [thread:$0]  %s763_s6, 128, %s765_s23, [#allocation9]  }
0x138b   :  { %v722_v24 = vpop.f32.mrf.mxu3 }
0x138c   :  { %v723_v25 = vadd.f32 %v1257_v53, %v722_v24 }
0x138e   :  { %732 = vst [vmem:[#allocation7 + $0x38] sm:$0xff] %v723_v25 }
0x138f   :  { %745 = dma.vmem_to_hbm [thread:$0]  %s738_s26, 1024, %s740_s29, [#allocation4], %s1028_s9, %s1028_s9, %s1029_s30  }
0x1390   :  { %1016 = dma.done.wait [#allocation4], 1024  }
0x1391   :  { %1017 = vsyncadd [#allocation4], 4294966272 }
0x1392   :  { %1018 = dma.done.wait [#allocation9], 256  }
0x1393   :  { %1019 = vsyncadd [#allocation9], 4294967040 }
0x1394   :  { %780 = vsyncpa [#allocation3], 1 }
0x1395   :  { %781 = vsyncpa [#allocation6], 1 }
0x1396   :  { %782 = vsyncpa [#allocation4], 1 }
0x1397   :  { %783 = vsyncpa [#allocation9], 1 }

</bundles_post_ra>
